<compile_context>
chip_gen: v7x
topology: tpu7x:2x2x1
jax: 0.10.0
libtpu: 0.0.40
codegen_flags: <defaults>
</compile_context>

<pallas_src>
import functools

import jax
import jax.numpy as jnp
from jax.experimental import pallas as pl
from jax.experimental.pallas import tpu as pltpu


_LANE = 128  # vreg lane width / MXU granularity; all feature dims pad to this


def _round_up(x, m):
    return ((x + m - 1) // m) * m


def _pad2d(a, rows, cols):
    pr, pc = rows - a.shape[0], cols - a.shape[1]
    if pr or pc:
        a = jnp.pad(a, ((0, pr), (0, pc)))
    return a


def _apply_act(y, activation):
    if activation == "relu":
        return jnp.maximum(y, 0.0)
    if activation == "tanh":
        return jnp.tanh(y)
    return y  # 'none'


def _vmem_capacity_bytes():
    """Generation-aware VMEM capacity (128 MiB v5e/v6e, 64 MiB v7x)."""
    try:
        cap = int(pltpu.get_tpu_info().vmem_capacity_bytes)
        if cap > 0:
            return cap
    except Exception:
        pass
    return 64 << 20  # conservative fallback (v7x per-TensorCore VMEM)


def _choose_tm(n, sub):
    """Pick batch-row tile tm and padded row count n_pad.

    - tm is a multiple of `sub` (sublane packing of the compute dtype).
    - Prefer >= 2 grid tiles so both v7x TensorCores get work.
    - Tiny batches pad to one sublane group, not 128 rows.
    - Large batches use big tiles (<=512) so weights are streamed fewer times
      and per-grid-step overhead is amortized.
    """
    n_sub = _round_up(max(n, 1), sub)
    if n_sub <= sub:                       # single sublane group -> one tile
        return n_sub, n_sub
    if n_sub <= 512:                       # small batch: split in two
        tm = _round_up(-(-n_sub // 2), sub)
        return tm, 2 * tm
    for tm in (512, 256, 128):             # large batch: big tiles
        if n_sub >= 2 * tm:
            return tm, _round_up(n_sub, tm)
    return 256, _round_up(n_sub, 256)


# ---------------------------------------------------------------------------
# Path 1: fully fused MLP (weights resident in VMEM, activations never leave)
# ---------------------------------------------------------------------------
def _mlp_fused_kernel(*refs, nlayers, activation):
    # refs = (x, w0, b0, w1, b1, ..., w_{L-1}, b_{L-1}, out)
    x_ref = refs[0]
    o_ref = refs[1 + 2 * nlayers]
    h = x_ref[...]                                       # (tm, pad_in0), compute dtype
    for l in range(nlayers):
        w = refs[1 + 2 * l][...]                         # (pad_in, pad_out), compute dtype
        b = refs[2 + 2 * l][...]                         # (1, pad_out), f32
        h = jnp.dot(h, w, preferred_element_type=jnp.float32) + b.astype(jnp.float32)
        if l < nlayers - 1:
            # activation in f32, downcast only for the next MXU feed
            h = _apply_act(h, activation).astype(x_ref.dtype)
    o_ref[...] = h.astype(o_ref.dtype)


def mlp_forward_fused(x_pad, padded_params, activation, *, tm, out_dtype, vmem_limit):
    n_pad, in0 = x_pad.shape
    nlayers = len(padded_params)
    out_last = padded_params[-1][0].shape[1]

    in_specs = [pl.BlockSpec((tm, in0), lambda i: (i, 0))]
    flat_wb = []
    for (w, b) in padded_params:
        fin, fout = w.shape
        # Loop-invariant blocks: single-buffered (no point double-buffering a
        # DMA that only ever happens once) -> halves resident-weight VMEM.
        in_specs.append(pl.BlockSpec((fin, fout), lambda i: (0, 0),
                                     pipeline_mode=pl.Buffered(1)))
        in_specs.append(pl.BlockSpec((1, fout), lambda i: (0, 0),
                                     pipeline_mode=pl.Buffered(1)))
        flat_wb += [w, b]

    kernel = functools.partial(
        _mlp_fused_kernel, nlayers=nlayers, activation=activation)
    return pl.pallas_call(
        kernel,
        out_shape=jax.ShapeDtypeStruct((n_pad, out_last), out_dtype),
        grid_spec=pltpu.PrefetchScalarGridSpec(
            num_scalar_prefetch=0,
            grid=(n_pad // tm,),
            in_specs=in_specs,
            out_specs=pl.BlockSpec((tm, out_last), lambda i: (i, 0)),
        ),
        compiler_params=pltpu.CompilerParams(
            dimension_semantics=("parallel",),
            vmem_limit_bytes=vmem_limit,
        ),
    )(x_pad, *flat_wb)


# ---------------------------------------------------------------------------
# Path 2: per-layer tiled linear (+activation) for weights that overflow VMEM
# ---------------------------------------------------------------------------
def _linear_act_single_k_kernel(x_ref, w_ref, b_ref, o_ref, *, activation):
    # Whole contraction dim in one tile: no scratch accumulator, no K axis.
    y = jnp.dot(x_ref[...], w_ref[...], preferred_element_type=jnp.float32)
    y = y + b_ref[...].astype(jnp.float32)
    o_ref[...] = _apply_act(y, activation).astype(o_ref.dtype)


def _linear_act_tiled_kernel(x_ref, w_ref, b_ref, o_ref, acc_ref, *, activation):
    k = pl.program_id(2)

    @pl.when(k == 0)
    def _():
        acc_ref[...] = jnp.zeros_like(acc_ref)

    acc_ref[...] += jnp.dot(x_ref[...], w_ref[...],
                            preferred_element_type=jnp.float32)

    @pl.when(k == pl.num_programs(2) - 1)
    def _():
        y = acc_ref[...] + b_ref[...].astype(jnp.float32)
        o_ref[...] = _apply_act(y, activation).astype(o_ref.dtype)


def _pick_tile(dim, candidates, whole_cap):
    if dim <= whole_cap:
        return dim                 # take the whole (padded) dim in one tile
    for c in candidates:
        if dim % c == 0:
            return c
    return _LANE                   # dims are multiples of 128 after padding


def linear_act_tiled(x_pad, w_pad, b_pad, activation, out_dtype, *, tm,
                     vmem_limit, max_single_k=1024):
    n_pad, k_pad = x_pad.shape
    _, nn_pad = w_pad.shape
    tk = _pick_tile(k_pad, (1024, 512, 256, 128), max_single_k)
    tn = _pick_tile(nn_pad, (512, 256, 128), 512)
    out_shape = jax.ShapeDtypeStruct((n_pad, nn_pad), out_dtype)

    if k_pad == tk:
        # Single K step: dot + bias + activation straight to the output tile.
        kernel = functools.partial(_linear_act_single_k_kernel,
                                   activation=activation)
        return pl.pallas_call(
            kernel,
            out_shape=out_shape,
            grid_spec=pltpu.PrefetchScalarGridSpec(
                num_scalar_prefetch=0,
                grid=(n_pad // tm, nn_pad // tn),
                in_specs=[
                    pl.BlockSpec((tm, k_pad), lambda i, j: (i, 0)),  # x rows
                    pl.BlockSpec((k_pad, tn), lambda i, j: (0, j)),  # W tile
                    pl.BlockSpec((1, tn), lambda i, j: (0, j)),      # bias
                ],
                out_specs=pl.BlockSpec((tm, tn), lambda i, j: (i, j)),
            ),
            compiler_params=pltpu.CompilerParams(
                dimension_semantics=("parallel", "parallel"),
                vmem_limit_bytes=vmem_limit,
            ),
        )(x_pad, w_pad, b_pad)

    kernel = functools.partial(_linear_act_tiled_kernel, activation=activation)
    return pl.pallas_call(
        kernel,
        out_shape=out_shape,
        grid_spec=pltpu.PrefetchScalarGridSpec(
            num_scalar_prefetch=0,
            grid=(n_pad // tm, nn_pad // tn, k_pad // tk),
            in_specs=[
                pl.BlockSpec((tm, tk), lambda i, j, k: (i, k)),   # x rows
                pl.BlockSpec((tk, tn), lambda i, j, k: (k, j)),   # W tile
                pl.BlockSpec((1, tn), lambda i, j, k: (0, j)),    # bias
            ],
            out_specs=pl.BlockSpec((tm, tn), lambda i, j, k: (i, j)),
            scratch_shapes=[pltpu.VMEM((tm, tn), jnp.float32)],
        ),
        compiler_params=pltpu.CompilerParams(
            dimension_semantics=("parallel", "parallel", "arbitrary"),
            vmem_limit_bytes=vmem_limit,
        ),
    )(x_pad, w_pad, b_pad)


# ---------------------------------------------------------------------------
# Wrapper: pad, cast, dispatch fused vs tiled, slice back
# ---------------------------------------------------------------------------
def mlp_forward(x, params, activation, *, compute_dtype=jnp.bfloat16,
                force_tiled=False, fused_budget_bytes=None, max_single_k=1024):
    """Mirrors MLP.forward: activation after every layer except the last.

    params: list of (W_t, b) with W_t = weight.T [in, out], b [1, out].
    compute_dtype: MXU feed dtype (bf16 by default; accumulation stays f32).
    """
    # Zero-padding correctness requires activation(0) == 0.
    assert activation in ("relu", "tanh", "none"), activation

    n, _ = x.shape
    nlayers = len(params)
    out_size = params[-1][0].shape[1]
    out_dtype = x.dtype
    compute_dtype = jnp.dtype(compute_dtype)

    vmem_cap = _vmem_capacity_bytes()
    if fused_budget_bytes is None:
        # leave headroom for x/out double-buffered tiles + compiler scratch
        fused_budget_bytes = int(vmem_cap * 0.72)

    pads_in = [_round_up(w.shape[0], _LANE) for (w, _) in params]
    pads_out = [_round_up(w.shape[1], _LANE) for (w, _) in params]

    sub = 16 if compute_dtype == jnp.bfloat16 else 8
    tm, n_pad = _choose_tm(n, sub)

    # zero-pad: extra cols of W / b are zero -> padded activations stay exactly
    # zero through relu/tanh/identity, so padding never contaminates results.
    x_pad = _pad2d(x.astype(compute_dtype), n_pad, pads_in[0])
    padded, weight_bytes = [], 0
    for li, (w, b) in enumerate(params):
        wp = _pad2d(w.astype(compute_dtype), pads_in[li], pads_out[li])
        bp = _pad2d(b.astype(jnp.float32), 1, pads_out[li])   # bias stays f32
        padded.append((wp, bp))
        weight_bytes += wp.size * wp.dtype.itemsize + bp.size * bp.dtype.itemsize

    # Fused-fit estimate: single-buffered resident weights (pl.Buffered(1)),
    # double-buffered x/out row tiles, f32 working activations, small margin.
    itm = compute_dtype.itemsize
    io_bytes = 2 * tm * (pads_in[0] + pads_out[-1]) * itm
    work_bytes = 2 * tm * max(pads_in + pads_out) * 4
    fused_est = weight_bytes + io_bytes + work_bytes + (4 << 20)

    use_fused = (not force_tiled) and fused_est <= fused_budget_bytes

    if use_fused:
        vmem_limit = int(min(vmem_cap, max(64 << 20, fused_est + (16 << 20))))
        out_pad = mlp_forward_fused(x_pad, padded, activation, tm=tm,
                                    out_dtype=out_dtype, vmem_limit=vmem_limit)
    else:
        # TODO(synk): for weights that overflow VMEM, keep the (tm x hidden)
        # activation resident across layers inside one kernel and stream only
        # weight K/N tiles (pltpu.emit_pipeline) instead of bouncing the
        # activation through HBM between per-layer pallas_calls.
        vmem_limit = int(min(vmem_cap, 64 << 20))
        h = x_pad
        for li, (wp, bp) in enumerate(padded):
            last = li == nlayers - 1
            act = "none" if last else activation
            odt = out_dtype if last else compute_dtype
            h = linear_act_tiled(h, wp, bp, act, odt, tm=tm,
                                 vmem_limit=vmem_limit,
                                 max_single_k=max_single_k)
        out_pad = h

    return out_pad[:n, :out_size]


# ---------------------------------------------------------------------------
# Parameters (synthetic, matching the PyTorch module's shapes)
# ---------------------------------------------------------------------------
def init_mlp_params(key, input_size, output_size, nlayers, hidden_size,
                    initialisation=None, dtype=jnp.float32):
    """Returns list of (W_t, b): W_t = weight.T [in, out], b [1, out]."""
    sizes = [input_size] + [hidden_size] * (nlayers - 1) + [output_size]
    params = []
    for li in range(nlayers):
        key, wk = jax.random.split(key)
        fin, fout = sizes[li], sizes[li + 1]
        if li == nlayers - 1 and initialisation == "zeros":
            w = jnp.zeros((fout, fin), dtype)
        else:
            # TODO(synk): first layer uses PyTorch default kaiming-uniform init;
            # we use N(0, 0.1) everywhere for synthetic params (forward identical).
            w = 0.1 * jax.random.normal(wk, (fout, fin), dtype)
        b = jnp.zeros((1, fout), dtype)
        params.append((w.T, b))
    return params


if __name__ == "__main__":
    key = jax.random.PRNGKey(0)

    def ref_forward(x, params, activation):
        h = x
        for (w_t, b) in params[:-1]:
            h = _apply_act(h @ w_t + b, activation)
        w_t, b = params[-1]
        return h @ w_t + b

    # ---- case 1: module-consistent small shapes, fused path, bf16 MXU feed ----
    batch, input_size, hidden_size, output_size, nlayers = 8, 4, 32, 2, 3
    pkey, xkey, key = jax.random.split(key, 3)
    params = init_mlp_params(pkey, input_size, output_size, nlayers, hidden_size)
    x = jax.random.normal(xkey, (batch, input_size), jnp.float32)

    out = mlp_forward(x, params, "relu")             # default bf16 compute
    jax.block_until_ready(out)
    ref = ref_forward(x, params, "relu")
    assert out.shape == (batch, output_size)
    # bf16 MXU feed: looser tolerance vs the f32 reference (documented).
    assert jnp.allclose(out, ref, atol=3e-2, rtol=3e-2)

    # ---- case 2: tiled fallback, f32 compute, single-K fast path ----
    batch2, in2, hid2, out2, nl2 = 200, 64, 256, 2, 3
    pkey2, xkey2, key = jax.random.split(key, 3)
    params2 = init_mlp_params(pkey2, in2, out2, nl2, hid2)
    x2 = jax.random.normal(xkey2, (batch2, in2), jnp.float32)

    out_t = mlp_forward(x2, params2, "tanh", compute_dtype=jnp.float32,
                        force_tiled=True)
    jax.block_until_ready(out_t)
    ref2 = ref_forward(x2, params2, "tanh")
    assert out_t.shape == (batch2, out2)
    assert jnp.allclose(out_t, ref2, atol=1e-4, rtol=1e-4)

    # ---- case 3: tiled fallback with a forced K-loop (exercises accumulator) ----
    out_k = mlp_forward(x2, params2, "tanh", compute_dtype=jnp.float32,
                        force_tiled=True, max_single_k=128)
    jax.block_until_ready(out_k)
    assert jnp.allclose(out_k, ref2, atol=1e-4, rtol=1e-4)

    print("KERNEL_OK")
</pallas_src>

<mosaic_0001>
module attributes {stable_mosaic.version = 11 : i64} {
  func.func @_mlp_fused_kernel(%arg0: i32, %arg1: memref<16x128xbf16, #tpu.memory_space<vmem>>, %arg2: memref<128x128xbf16, #tpu.memory_space<vmem>>, %arg3: memref<1x128xf32, #tpu.memory_space<vmem>>, %arg4: memref<128x128xbf16, #tpu.memory_space<vmem>>, %arg5: memref<1x128xf32, #tpu.memory_space<vmem>>, %arg6: memref<128x128xbf16, #tpu.memory_space<vmem>>, %arg7: memref<1x128xf32, #tpu.memory_space<vmem>>, %arg8: memref<16x128xf32, #tpu.memory_space<vmem>>) attributes {dimension_semantics = [#tpu.dimension_semantics<parallel>], iteration_bounds = array<i64: 1>, scalar_prefetch = 0 : i64, scratch_operands = 0 : i64, tpu.core_type = #tpu.core_type<tc>, window_params = [{transform_indices = @transform_0, window_bounds = array<i64: 16, 128>}, {pipeline_mode = #tpu.pipeline_mode<synchronous>, transform_indices = @transform_1, window_bounds = array<i64: 128, 128>}, {pipeline_mode = #tpu.pipeline_mode<synchronous>, transform_indices = @transform_2, window_bounds = array<i64: 1, 128>}, {pipeline_mode = #tpu.pipeline_mode<synchronous>, transform_indices = @transform_3, window_bounds = array<i64: 128, 128>}, {pipeline_mode = #tpu.pipeline_mode<synchronous>, transform_indices = @transform_4, window_bounds = array<i64: 1, 128>}, {pipeline_mode = #tpu.pipeline_mode<synchronous>, transform_indices = @transform_5, window_bounds = array<i64: 128, 128>}, {pipeline_mode = #tpu.pipeline_mode<synchronous>, transform_indices = @transform_6, window_bounds = array<i64: 1, 128>}, {transform_indices = @transform_7, window_bounds = array<i64: 16, 128>}]} {
    %c0 = arith.constant 0 : index
    %c0_0 = arith.constant 0 : index
    %0 = vector.load %arg1[%c0, %c0_0] : memref<16x128xbf16, #tpu.memory_space<vmem>>, vector<16x128xbf16>
    %c0_1 = arith.constant 0 : index
    %c0_2 = arith.constant 0 : index
    %1 = vector.load %arg2[%c0_1, %c0_2] : memref<128x128xbf16, #tpu.memory_space<vmem>>, vector<128x128xbf16>
    %c0_3 = arith.constant 0 : index
    %c0_4 = arith.constant 0 : index
    %2 = vector.load %arg3[%c0_3, %c0_4] : memref<1x128xf32, #tpu.memory_space<vmem>>, vector<1x128xf32>
    %cst = arith.constant dense<0.000000e+00> : vector<16x128xf32>
    %3 = tpu.matmul %0, %1, %cst {dimension_numbers = #tpu.dot_dimension_numbers<[1], [0], [0], [1], [0, 0, 1, 1], [], []>} : vector<16x128xbf16>, vector<128x128xbf16>, vector<16x128xf32> -> vector<16x128xf32>
    %4 = vector.broadcast %2 : vector<1x128xf32> to vector<16x128xf32>
    %5 = arith.addf %3, %4 : vector<16x128xf32>
    %cst_5 = arith.constant 0.000000e+00 : f32
    %6 = vector.broadcast %cst_5 : f32 to vector<16x128xf32>
    %7 = arith.maximumf %5, %6 : vector<16x128xf32>
    %8 = arith.truncf %7 : vector<16x128xf32> to vector<16x128xbf16>
    %c0_6 = arith.constant 0 : index
    %c0_7 = arith.constant 0 : index
    %9 = vector.load %arg4[%c0_6, %c0_7] : memref<128x128xbf16, #tpu.memory_space<vmem>>, vector<128x128xbf16>
    %c0_8 = arith.constant 0 : index
    %c0_9 = arith.constant 0 : index
    %10 = vector.load %arg5[%c0_8, %c0_9] : memref<1x128xf32, #tpu.memory_space<vmem>>, vector<1x128xf32>
    %cst_10 = arith.constant dense<0.000000e+00> : vector<16x128xf32>
    %11 = tpu.matmul %8, %9, %cst_10 {dimension_numbers = #tpu.dot_dimension_numbers<[1], [0], [0], [1], [0, 0, 1, 1], [], []>} : vector<16x128xbf16>, vector<128x128xbf16>, vector<16x128xf32> -> vector<16x128xf32>
    %12 = vector.broadcast %10 : vector<1x128xf32> to vector<16x128xf32>
    %13 = arith.addf %11, %12 : vector<16x128xf32>
    %cst_11 = arith.constant 0.000000e+00 : f32
    %14 = vector.broadcast %cst_11 : f32 to vector<16x128xf32>
    %15 = arith.maximumf %13, %14 : vector<16x128xf32>
    %16 = arith.truncf %15 : vector<16x128xf32> to vector<16x128xbf16>
    %c0_12 = arith.constant 0 : index
    %c0_13 = arith.constant 0 : index
    %17 = vector.load %arg6[%c0_12, %c0_13] : memref<128x128xbf16, #tpu.memory_space<vmem>>, vector<128x128xbf16>
    %c0_14 = arith.constant 0 : index
    %c0_15 = arith.constant 0 : index
    %18 = vector.load %arg7[%c0_14, %c0_15] : memref<1x128xf32, #tpu.memory_space<vmem>>, vector<1x128xf32>
    %cst_16 = arith.constant dense<0.000000e+00> : vector<16x128xf32>
    %19 = tpu.matmul %16, %17, %cst_16 {dimension_numbers = #tpu.dot_dimension_numbers<[1], [0], [0], [1], [0, 0, 1, 1], [], []>} : vector<16x128xbf16>, vector<128x128xbf16>, vector<16x128xf32> -> vector<16x128xf32>
    %20 = vector.broadcast %18 : vector<1x128xf32> to vector<16x128xf32>
    %21 = arith.addf %19, %20 : vector<16x128xf32>
    %c0_17 = arith.constant 0 : index
    %c0_18 = arith.constant 0 : index
    %22 = vector.load %arg8[%c0_17, %c0_18] : memref<16x128xf32, #tpu.memory_space<vmem>>, vector<16x128xf32>
    tpu.vector_store %arg8[%c0_17, %c0_18], %21 {strides = array<i32>} : memref<16x128xf32, #tpu.memory_space<vmem>>, vector<16x128xf32>,
    return
  }
  func.func @transform_0(%arg0: i32) -> (i32, i32) {
    %c0_i32 = arith.constant 0 : i32
    %c0_i32_0 = arith.constant 0 : i32
    return %arg0, %c0_i32 : i32, i32
  }
  func.func @transform_1(%arg0: i32) -> (i32, i32) {
    %c0_i32 = arith.constant 0 : i32
    %c0_i32_0 = arith.constant 0 : i32
    %c0_i32_1 = arith.constant 0 : i32
    return %c0_i32, %c0_i32_0 : i32, i32
  }
  func.func @transform_2(%arg0: i32) -> (i32, i32) {
    %c0_i32 = arith.constant 0 : i32
    %c0_i32_0 = arith.constant 0 : i32
    %c0_i32_1 = arith.constant 0 : i32
    return %c0_i32, %c0_i32_0 : i32, i32
  }
  func.func @transform_3(%arg0: i32) -> (i32, i32) {
    %c0_i32 = arith.constant 0 : i32
    %c0_i32_0 = arith.constant 0 : i32
    %c0_i32_1 = arith.constant 0 : i32
    return %c0_i32, %c0_i32_0 : i32, i32
  }
  func.func @transform_4(%arg0: i32) -> (i32, i32) {
    %c0_i32 = arith.constant 0 : i32
    %c0_i32_0 = arith.constant 0 : i32
    %c0_i32_1 = arith.constant 0 : i32
    return %c0_i32, %c0_i32_0 : i32, i32
  }
  func.func @transform_5(%arg0: i32) -> (i32, i32) {
    %c0_i32 = arith.constant 0 : i32
    %c0_i32_0 = arith.constant 0 : i32
    %c0_i32_1 = arith.constant 0 : i32
    return %c0_i32, %c0_i32_0 : i32, i32
  }
  func.func @transform_6(%arg0: i32) -> (i32, i32) {
    %c0_i32 = arith.constant 0 : i32
    %c0_i32_0 = arith.constant 0 : i32
    %c0_i32_1 = arith.constant 0 : i32
    return %c0_i32, %c0_i32_0 : i32, i32
  }
  func.func @transform_7(%arg0: i32) -> (i32, i32) {
    %c0_i32 = arith.constant 0 : i32
    %c0_i32_0 = arith.constant 0 : i32
    return %arg0, %c0_i32 : i32, i32
  }
}

</mosaic_0001>

<bundles_post_ra>
// kernel: tpu_custom_call.1
= control target key start
LH: loop header
LB: loop body
LE: loop exit
PB: predicated region body
PF: predicated region fallthrough
CT: control target
= control target key end

     0   :  { %12 = vsyncpa [#allocation3], 0  ;;  %s1035_s0 = inlined_call_operand.hbm [shape: bf16[16,128], index: 0, kind: input, shape index: {}]   ;;  %s1036_s1 = inlined_call_operand.hbm [shape: bf16[128,128], index: 1, kind: input, shape index: {}]   ;;  %s1037_s2 = inlined_call_operand.hbm [shape: f32[1,128], index: 2, kind: input, shape index: {}]   ;;  %s1038_s3 = inlined_call_operand.hbm [shape: bf16[128,128], index: 3, kind: input, shape index: {}]   ;;  %s1039_s4 = inlined_call_operand.hbm [shape: f32[1,128], index: 4, kind: input, shape index: {}]   ;;  %s1040_s5 = inlined_call_operand.hbm [shape: bf16[128,128], index: 5, kind: input, shape index: {}]   ;;  %s1041_s6 = inlined_call_operand.hbm [shape: f32[1,128], index: 6, kind: input, shape index: {}]   ;;  %s1042_s7 = inlined_call_operand.hbm [shape: f32[16,128], index: 7, kind: output, shape index: {}]  }
   0x1   :  { %13 = vsyncpa [#allocation6], 0 }
   0x2   :  { %14 = vsyncpa [#allocation9], 0 }
   0x3   :  { %15 = vsyncpa [#allocation12], 0 }
   0x4   :  { %16 = vsyncpa [#allocation4], 0  ;;  %s829_s24 = smov [#allocation5]   ;;  %s830_s26 = smov [#allocation8]  }
   0x5   :  { %s34_s25 = sshll.u32 %s829_s24, 4  ;;  %s56_s27 = sshll.u32 %s830_s26, 4  ;;  %s35_s25 = int_to_ptr.vmem [resolvable:$true] %s34_s25  ;;  %s883_s27 = int_to_ptr.vmem [resolvable:$true] %s56_s27 }
   0x6   :  { %s643_s30 = scalar_lea.hbm %s1036_s1, 1024 }
   0x7   :  { %p644_p0 = scmp.ne.s32.totalorder %s1036_s1, %s643_s30  ;;  %p647_p1 = scmp.lt.u32.totalorder %s643_s30, %s1036_s1 }
   0x9   :  { %p649_p2 = pnand %p647_p1, %p644_p0 }
   0xb   :  { %652 = shalt.err (!%p649_p2)
}
   0xc   :  { %s653_s12 = scalar_lea.vmem %s35_s25, 1024  ;;  %p658_p4 = scmp.lt.s32.totalorder %s35_s25, %s35_s25 }
   0xd   :  { %p654_p3 = scmp.ne.s32.totalorder %s35_s25, %s653_s12  ;;  %p659_p5 = scmp.lt.s32.totalorder %s653_s12, %s653_s12 }
   0xf   :  { %p660_p6 = por %p659_p5, %p658_p4 }
  0x11   :  { %p661_p7 = pnand %p660_p6, %p654_p3 }
  0x13   :  { %664 = shalt.err (!%p661_p7)
}
  0x14   :  { %s831_s13 = smov 64   ;;  %s832_s14 = smov 4  }
  0x15   :  { %40 = dma.hbm_to_vmem [thread:$0]  %s1036_s1, 1024, %s35_s25, [#allocation6], %s831_s13, %s831_s13, %s832_s14  }
  0x16   :  { %s665_s19 = scalar_lea.hbm %s1038_s3, 1024 }
  0x17   :  { %p666_p8 = scmp.ne.s32.totalorder %s1038_s3, %s665_s19  ;;  %p669_p9 = scmp.lt.u32.totalorder %s665_s19, %s1038_s3 }
  0x19   :  { %p671_p10 = pnand %p669_p9, %p666_p8 }
  0x1b   :  { %674 = shalt.err (!%p671_p10)
}
  0x1c   :  { %s675_s24 = scalar_lea.vmem %s883_s27, 1024  ;;  %p680_p12 = scmp.lt.s32.totalorder %s883_s27, %s883_s27 }
  0x1d   :  { %p676_p11 = scmp.ne.s32.totalorder %s883_s27, %s675_s24  ;;  %p681_p13 = scmp.lt.s32.totalorder %s675_s24, %s675_s24 }
  0x1f   :  { %p682_p0 = por %p681_p13, %p680_p12 }
  0x21   :  { %p683_p1 = pnand %p682_p0, %p676_p11 }
  0x23   :  { %686 = shalt.err (!%p683_p1)
}
  0x24   :  { %62 = dma.hbm_to_vmem [thread:$0]  %s1038_s3, 1024, %s883_s27, [#allocation9], %s831_s13, %s831_s13, %s832_s14  }
  0x25   :  { %s833_s26 = smov [#allocation11]   ;;  %s834_s29 = smov [#allocation2]  }
  0x26   :  { %s78_s28 = sshll.u32 %s833_s26, 4  ;;  %s22_s30 = sshll.u32 %s834_s29, 4  ;;  %s79_s28 = int_to_ptr.vmem [resolvable:$true] %s78_s28  ;;  %s920_s30 = int_to_ptr.vmem [resolvable:$true] %s22_s30 }
  0x27   :  { %s687_s10 = scalar_lea.hbm %s1040_s5, 1024 }
  0x28   :  { %p688_p2 = scmp.ne.s32.totalorder %s1040_s5, %s687_s10  ;;  %p691_p3 = scmp.lt.u32.totalorder %s687_s10, %s1040_s5 }
  0x2a   :  { %p693_p4 = pnand %p691_p3, %p688_p2 }
  0x2c   :  { %696 = shalt.err (!%p693_p4)
}
  0x2d   :  { %s697_s3 = scalar_lea.vmem %s79_s28, 1024  ;;  %p702_p6 = scmp.lt.s32.totalorder %s79_s28, %s79_s28 }
  0x2e   :  { %p698_p5 = scmp.ne.s32.totalorder %s79_s28, %s697_s3  ;;  %p703_p7 = scmp.lt.s32.totalorder %s697_s3, %s697_s3 }
  0x30   :  { %p704_p8 = por %p703_p7, %p702_p6 }
  0x32   :  { %p705_p9 = pnand %p704_p8, %p698_p5 }
  0x34   :  { %708 = shalt.err (!%p705_p9)
}
  0x35   :  { %84 = dma.hbm_to_vmem [thread:$0]  %s1040_s5, 1024, %s79_s28, [#allocation12], %s831_s13, %s831_s13, %s832_s14  }
  0x36   :  { %s709_s20 = scalar_lea.hbm %s1035_s0, 128 }
  0x37   :  { %p710_p10 = scmp.ne.s32.totalorder %s1035_s0, %s709_s20  ;;  %p713_p11 = scmp.lt.u32.totalorder %s709_s20, %s1035_s0 }
  0x39   :  { %p715_p12 = pnand %p713_p11, %p710_p10 }
  0x3b   :  { %718 = shalt.err (!%p715_p12)
}
  0x3c   :  { %s719_s1 = scalar_lea.vmem %s920_s30, 128  ;;  %p724_p0 = scmp.lt.s32.totalorder %s920_s30, %s920_s30 }
  0x3d   :  { %p720_p13 = scmp.ne.s32.totalorder %s920_s30, %s719_s1  ;;  %p725_p1 = scmp.lt.s32.totalorder %s719_s1, %s719_s1 }
  0x3f   :  { %p726_p2 = por %p725_p1, %p724_p0 }
  0x41   :  { %p727_p3 = pnand %p726_p2, %p720_p13 }
  0x43   :  { %730 = shalt.err (!%p727_p3)
}
  0x44   :  { %28 = dma.hbm_to_vmem [thread:$0]  %s1035_s0, 128, %s920_s30, [#allocation3], %s831_s13, %s831_s13, %s832_s14  }
  0x45   :  { %s835_s26 = smov [#allocation7]   ;;  %s836_s29 = smov [#allocation10]  }
  0x46   :  { %s47_s28 = sshll.u32 %s835_s26, 4  ;;  %s69_s8 = sshll.u32 %s836_s29, 4  ;;  %s48_s28 = int_to_ptr.vmem [resolvable:$true] %s47_s28  ;;  %s70_s8 = int_to_ptr.vmem [resolvable:$true] %s69_s8 }
  0x47   :  { %s731_s11 = scalar_lea.hbm %s1037_s2, 16 }
  0x48   :  { %p732_p4 = scmp.ne.s32.totalorder %s1037_s2, %s731_s11  ;;  %p735_p5 = scmp.lt.u32.totalorder %s731_s11, %s1037_s2 }
  0x4a   :  { %p737_p6 = pnand %p735_p5, %p732_p4 }
  0x4c   :  { %740 = shalt.err (!%p737_p6)
}
  0x4d   :  { %s741_s0 = scalar_lea.vmem %s48_s28, 16  ;;  %s745_s13 = scalar_lea.vmem %s48_s28, 32 }
  0x4e   :  { %p742_p7 = scmp.ne.s32.totalorder %s48_s28, %s741_s0  ;;  %p746_p8 = scmp.lt.s32.totalorder %s48_s28, %s48_s28 }
  0x4f   :  { %p747_p9 = scmp.lt.s32.totalorder %s745_s13, %s741_s0 }
  0x51   :  { %p748_p10 = por %p747_p9, %p746_p8 }
  0x53   :  { %p749_p11 = pnand %p748_p10, %p742_p7 }
  0x55   :  { %752 = shalt.err (!%p749_p11)
}
  0x56   :  { %50 = dma.hbm_to_vmem [thread:$0]  %s1037_s2, 16, %s48_s28, [#allocation6]  }
  0x57   :  { %s753_s18 = scalar_lea.hbm %s1039_s4, 16 }
  0x58   :  { %p754_p12 = scmp.ne.s32.totalorder %s1039_s4, %s753_s18  ;;  %p757_p13 = scmp.lt.u32.totalorder %s753_s18, %s1039_s4 }
  0x5a   :  { %p759_p0 = pnand %p757_p13, %p754_p12 }
  0x5c   :  { %762 = shalt.err (!%p759_p0)
}
  0x5d   :  { %s763_s23 = scalar_lea.vmem %s70_s8, 16  ;;  %s767_s24 = scalar_lea.vmem %s70_s8, 32 }
  0x5e   :  { %p764_p1 = scmp.ne.s32.totalorder %s70_s8, %s763_s23  ;;  %p768_p2 = scmp.lt.s32.totalorder %s70_s8, %s70_s8 }
  0x5f   :  { %p769_p3 = scmp.lt.s32.totalorder %s767_s24, %s763_s23 }
  0x61   :  { %p770_p4 = por %p769_p3, %p768_p2 }
  0x63   :  { %p771_p5 = pnand %p770_p4, %p764_p1 }
  0x65   :  { %774 = shalt.err (!%p771_p5)
}
  0x66   :  { %72 = dma.hbm_to_vmem [thread:$0]  %s1039_s4, 16, %s70_s8, [#allocation9]  }
  0x67   :  { %s837_s5 = smov [#allocation13]   ;;  %s775_s29 = scalar_lea.hbm %s1041_s6, 16 }
  0x68   :  { %s91_s25 = sshll.u32 %s837_s5, 4  ;;  %p776_p6 = scmp.ne.s32.totalorder %s1041_s6, %s775_s29  ;;  %s92_s25 = int_to_ptr.vmem [resolvable:$true] %s91_s25 }
  0x69   :  { %p779_p7 = scmp.lt.u32.totalorder %s775_s29, %s1041_s6 }
  0x6b   :  { %p781_p8 = pnand %p779_p7, %p776_p6 }
  0x6d   :  { %784 = shalt.err (!%p781_p8)
}
  0x6e   :  { %s785_s15 = scalar_lea.vmem %s92_s25, 16  ;;  %s789_s4 = scalar_lea.vmem %s92_s25, 32 }
  0x6f   :  { %p786_p9 = scmp.ne.s32.totalorder %s92_s25, %s785_s15  ;;  %p790_p10 = scmp.lt.s32.totalorder %s92_s25, %s92_s25 }
  0x70   :  { %p791_p11 = scmp.lt.s32.totalorder %s789_s4, %s785_s15 }
  0x72   :  { %p792_p12 = por %p791_p11, %p790_p10 }
  0x74   :  { %p793_p13 = pnand %p792_p12, %p786_p9 }
  0x76   :  { %796 = shalt.err (!%p793_p13)
}
  0x77   :  { %94 = dma.hbm_to_vmem [thread:$0]  %s1041_s6, 16, %s92_s25, [#allocation12]  }
  0x78   :  { %819 = dma.done.wait [#allocation3], 128  }
  0x79   :  { %820 = vsyncadd [#allocation3], 4294967168 }
  0x7a   :  { %821 = dma.done.wait [#allocation6], 1040  }
  0x7b   :  { %822 = vsyncadd [#allocation6], 4294966256 }
  0x7c   :  { %823 = dma.done.wait [#allocation9], 1040  }
  0x7d   :  { %824 = vsyncadd [#allocation9], 4294966256 }
  0x7e   :  { %825 = dma.done.wait [#allocation12], 1040  }
  0x7f   :  { %826 = vsyncadd [#allocation12], 4294966256  ;;  %v838_v0 = vmov 0.0   ;;  %vm839_vm0 = vmmov 0   ;;  %v618_v1 = vld [vmem:[#allocation5] sm:$0xff]   ;;  %v619_v2 = vld [vmem:[#allocation5 + $0x8] sm:$0xff]  }
  0x80   :  { %544 = vmatprep.subr.bf16.mxu0 %v838_v0  ;;  %560 = vmatprep.mubr.msk.bf16.mxu0 %vm839_vm0, %v838_v0  ;;  %v620_v3 = vld [vmem:[#allocation5 + $0x10] sm:$0xff]   ;;  %v627_v4 = vld [vmem:[#allocation8] sm:$0xff]   ;;  %v621_v5 = vld [vmem:[#allocation5 + $0x18] sm:$0xff]   ;;  %s840_s6 = smov [#allocation14]  }
  0x81   :  { %564 = vmatprep.subr.bf16.mxu1 %v838_v0  ;;  %580 = vmatprep.mubr.msk.bf16.mxu1 %vm839_vm0, %v838_v0  ;;  %v628_v6 = vld [vmem:[#allocation8 + $0x8] sm:$0xff]   ;;  %v622_v7 = vld [vmem:[#allocation5 + $0x20] sm:$0xff]   ;;  %v629_v8 = vld [vmem:[#allocation8 + $0x10] sm:$0xff]   ;;  %s474_s3 = sshll.u32 %s840_s6, 4  ;;  %s475_s3 = int_to_ptr.vmem [resolvable:$true] %s474_s3 }
  0x82   :  { %545 = vmatpush3.bf16.msra.mxu0 %v618_v1  ;;  %565 = vmatpush3.bf16.msra.mxu1 %v627_v4  ;;  %v623_v9 = vld [vmem:[#allocation5 + $0x28] sm:$0xff]   ;;  %v630_v10 = vld [vmem:[#allocation8 + $0x18] sm:$0xff]   ;;  %v624_v11 = vld [vmem:[#allocation5 + $0x30] sm:$0xff]   ;;  %s797_s0 = scalar_lea.vmem %s475_s3, 256  ;;  %p802_p1 = scmp.lt.s32.totalorder %s475_s3, %s475_s3 }
  0x83   :  { %546 = vmatprep.subr.bf16.mxu0 %v838_v0  ;;  %566 = vmatprep.subr.bf16.mxu1 %v838_v0  ;;  %v631_v12 = vld [vmem:[#allocation8 + $0x20] sm:$0xff]   ;;  %v625_v13 = vld [vmem:[#allocation5 + $0x38] sm:$0xff]   ;;  %v632_v14 = vld [vmem:[#allocation8 + $0x28] sm:$0xff]   ;;  %p798_p0 = scmp.ne.s32.totalorder %s475_s3, %s797_s0  ;;  %p803_p2 = scmp.lt.s32.totalorder %s797_s0, %s797_s0 }
  0x84   :  { %v626_v15 = vld [vmem:[#allocation2] sm:$0xff]   ;;  %v635_v18 = vld [vmem:[#allocation11] sm:$0xff]   ;;  %v636_v19 = vld [vmem:[#allocation11 + $0x8] sm:$0xff]  }
  0x85   :  { %v633_v16 = vld [vmem:[#allocation8 + $0x30] sm:$0xff]   ;;  %v634_v17 = vld [vmem:[#allocation8 + $0x38] sm:$0xff]   ;;  %v639_v22 = vld [vmem:[#allocation11 + $0x20] sm:$0xff]   ;;  %p804_p3 = por %p803_p2, %p802_p1 }
  0x86   :  { %547 = vmatpush3.bf16.msra.mxu0 %v619_v2  ;;  %567 = vmatpush3.bf16.msra.mxu1 %v628_v6  ;;  %v637_v20 = vld [vmem:[#allocation11 + $0x10] sm:$0xff]   ;;  %v638_v21 = vld [vmem:[#allocation11 + $0x18] sm:$0xff]   ;;  %v640_v23 = vld [vmem:[#allocation11 + $0x28] sm:$0xff]  }
  0x87   :  { %548 = vmatprep.subr.bf16.mxu0 %v838_v0  ;;  %568 = vmatprep.subr.bf16.mxu1 %v838_v0  ;;  %v489_v24 = vld [vmem:[#allocation7] ss:$0 sm:$0xff]  ;;  %v641_v34 = vld [vmem:[#allocation11 + $0x30] sm:$0xff]   ;;  %v499_v36 = vld [vmem:[#allocation10] ss:$0 sm:$0xff]  ;;  %p805_p4 = pnand %p804_p3, %p798_p0 }
  0x88   :  { %v642_v35 = vld [vmem:[#allocation11 + $0x38] sm:$0xff]   ;;  %v508_v46 = vld [vmem:[#allocation13] ss:$0 sm:$0xff] }
  0x8a   :  { %549 = vmatpush3.bf16.msra.mxu0 %v620_v3  ;;  %569 = vmatpush3.bf16.msra.mxu1 %v629_v8 }
  0x8b   :  { %550 = vmatprep.subr.bf16.mxu0 %v838_v0  ;;  %570 = vmatprep.subr.bf16.mxu1 %v838_v0 }
  0x8e   :  { %551 = vmatpush3.bf16.msra.mxu0 %v621_v5  ;;  %571 = vmatpush3.bf16.msra.mxu1 %v630_v10 }
  0x8f   :  { %552 = vmatprep.subr.bf16.mxu0 %v838_v0  ;;  %572 = vmatprep.subr.bf16.mxu1 %v838_v0 }
  0x92   :  { %553 = vmatpush3.bf16.msra.mxu0 %v622_v7  ;;  %573 = vmatpush3.bf16.msra.mxu1 %v631_v12 }
  0x93   :  { %554 = vmatprep.subr.bf16.mxu0 %v838_v0  ;;  %574 = vmatprep.subr.bf16.mxu1 %v838_v0 }
  0x96   :  { %555 = vmatpush3.bf16.msra.mxu0 %v623_v9  ;;  %575 = vmatpush3.bf16.msra.mxu1 %v632_v14 }
  0x97   :  { %556 = vmatprep.subr.bf16.mxu0 %v838_v0  ;;  %576 = vmatprep.subr.bf16.mxu1 %v838_v0 }
  0x9a   :  { %557 = vmatpush3.bf16.msra.mxu0 %v624_v11  ;;  %577 = vmatpush3.bf16.msra.mxu1 %v633_v16 }
  0x9b   :  { %558 = vmatprep.subr.bf16.mxu0 %v838_v0  ;;  %578 = vmatprep.subr.bf16.mxu1 %v838_v0 }
  0x9e   :  { %559 = vmatpush3.bf16.msra.mxu0 %v625_v13  ;;  %579 = vmatpush3.bf16.msra.mxu1 %v634_v17 }
  0x9f   :  { %584 = vmatprep.subr.bf16.mxu0 %v838_v0 }
  0xa1   :  { %561 = vmatmul.mubr.bf16.vlgmr.msra.gmra.mrb[0].mxu0 %v626_v15 }
  0xa2   :  { %600 = vmatprep.mubr.msk.bf16.mxu0 %vm839_vm0, %v838_v0  ;;  %585 = vmatpush3.bf16.msra.mxu0 %v635_v18 }
  0xa3   :  { %586 = vmatprep.subr.bf16.mxu0 %v838_v0 }
  0xa6   :  { %587 = vmatpush3.bf16.msra.mxu0 %v636_v19 }
  0xa7   :  { %588 = vmatprep.subr.bf16.mxu0 %v838_v0 }
  0xaa   :  { %589 = vmatpush3.bf16.msra.mxu0 %v637_v20 }
  0xab   :  { %590 = vmatprep.subr.bf16.mxu0 %v838_v0 }
  0xae   :  { %591 = vmatpush3.bf16.msra.mxu0 %v638_v21 }
  0xaf   :  { %592 = vmatprep.subr.bf16.mxu0 %v838_v0 }
  0xb2   :  { %593 = vmatpush3.bf16.msra.mxu0 %v639_v22 }
  0xb3   :  { %594 = vmatprep.subr.bf16.mxu0 %v838_v0 }
  0xb6   :  { %595 = vmatpush3.bf16.msra.mxu0 %v640_v23 }
  0xb7   :  { %596 = vmatprep.subr.bf16.mxu0 %v838_v0 }
  0xba   :  { %597 = vmatpush3.bf16.msra.mxu0 %v641_v34 }
  0xbb   :  { %598 = vmatprep.subr.bf16.mxu0 %v838_v0 }
  0xbe   :  { %599 = vmatpush3.bf16.msra.mxu0 %v642_v35 }
 0x174   :  { %v230_v25 = vpop.f32.mrb[0].mxu0 }
 0x175   :  { %v231_v26 = vadd.f32 %v489_v24, %v230_v25  ;;  %v562_v27 = vpop.f32.mrb[1].mxu0 }
 0x176   :  { %v233_v28 = vpop.f32.mrb[2].mxu0 }
 0x177   :  { %v234_v29 = vadd.f32 %v489_v24, %v233_v28  ;;  %v563_v30 = vpop.f32.mrb[3].mxu0  ;;  %v237_v31 = vmax.f32 %v231_v26, 0.0 }
 0x179   :  { %v238_v32 = vmax.f32 %v234_v29, 0.0 }
 0x17b   :  { %v239_v33 = vpack.c.bf16 %v238_v32, %v237_v31 }
 0x17d   :  { %581 = vmatmul.mubr.bf16.vlgmr.msra.gmra.mrb[0].mxu1 %v239_v33 }
 0x250   :  { %v345_v37 = vpop.f32.mrb[0].mxu1 }
 0x251   :  { %v346_v38 = vadd.f32 %v499_v36, %v345_v37  ;;  %v582_v39 = vpop.f32.mrb[1].mxu1 }
 0x252   :  { %v348_v40 = vpop.f32.mrb[2].mxu1 }
 0x253   :  { %v349_v41 = vadd.f32 %v499_v36, %v348_v40  ;;  %v583_v42 = vpop.f32.mrb[3].mxu1  ;;  %v352_v43 = vmax.f32 %v346_v38, 0.0 }
 0x255   :  { %v353_v44 = vmax.f32 %v349_v41, 0.0 }
 0x257   :  { %v354_v45 = vpack.c.bf16 %v353_v44, %v352_v43 }
 0x259   :  { %601 = vmatmul.mubr.bf16.vlgmr.msra.gmra.mrb[4].mxu0 %v354_v45 }
 0x32c   :  { %v460_v47 = vpop.f32.mrb[4].mxu0 }
 0x32d   :  { %v461_v48 = vadd.f32 %v508_v46, %v460_v47  ;;  %v602_v49 = vpop.f32.mrb[5].mxu0 }
 0x32e   :  { %v463_v50 = vpop.f32.mrb[6].mxu0 }
 0x32f   :  { %467 = vst [vmem:[#allocation14] sm:$0xff] %v461_v48  ;;  %v464_v51 = vadd.f32 %v508_v46, %v463_v50  ;;  %v603_v52 = vpop.f32.mrb[7].mxu0 }
 0x331   :  { %468 = vst [vmem:[#allocation14 + $0x8] sm:$0xff] %v464_v51 }
 0x332   :  { %808 = shalt.err (!%p805_p4)
}
 0x333   :  { %s809_s30 = scalar_lea.hbm %s1042_s7, 256 }
 0x334   :  { %p810_p5 = scmp.ne.s32.totalorder %s1042_s7, %s809_s30  ;;  %p813_p6 = scmp.lt.u32.totalorder %s809_s30, %s1042_s7 }
 0x336   :  { %p815_p7 = pnand %p813_p6, %p810_p5 }
 0x338   :  { %818 = shalt.err (!%p815_p7)
}
 0x339   :  { %s841_s20 = smov 128   ;;  %s842_s21 = smov 8  }
 0x33a   :  { %480 = dma.vmem_to_hbm [thread:$0]  %s475_s3, 256, %s1042_s7, [#allocation4], %s841_s20, %s841_s20, %s842_s21  }
 0x33b   :  { %827 = dma.done.wait [#allocation4], 256  }
 0x33c   :  { %828 = vsyncadd [#allocation4], 4294967040 }
 0x33d   :  { %484 = vsyncpa [#allocation3], 1 }
 0x33e   :  { %485 = vsyncpa [#allocation6], 1 }
 0x33f   :  { %486 = vsyncpa [#allocation9], 1 }
 0x340   :  { %487 = vsyncpa [#allocation12], 1 }
 0x341   :  { %488 = vsyncpa [#allocation4], 1 }

</bundles_post_ra>
